<compile_context>
chip_gen: v5e
topology: v5e:2x2
jax: 0.10.0
libtpu: 0.0.40
codegen_flags: <defaults>
</compile_context>

<pallas_src>
import jax
import jax.numpy as jnp
from jax.experimental import pallas as pl
from jax.experimental.pallas import tpu as pltpu


def _apply_noise_kernel(scale_ref, x_ref, noise_ref, o_ref):
    # scale_ref: (1,) f32 scalar in SMEM.
    # x_ref / o_ref: (1, TC, TW) VMEM tiles; noise_ref: (1, 1, TW) VMEM tile
    # broadcast in-register over the channel tile (VPU FMA, no XLU traffic).
    s = scale_ref[0]
    o_ref[...] = (x_ref[...] + s * noise_ref[...]).astype(o_ref.dtype)


def _choose_tiles(C, HW, itemsize):
    """Pick (channel_tile, lane_tile) for a (B, C, HW) layout."""
    LANE = 128
    sublane = {4: 8, 2: 16, 1: 32}.get(itemsize, 8)
    target_bytes = 1 << 20  # ~1 MiB of x per tile (near the HBM-roofline knee).

    if HW % LANE == 0:
        max_blocks = HW // LANE
        want_blocks = max(target_bytes // (LANE * itemsize), 1)
        # Largest divisor of max_blocks that is <= want_blocks -> tw | HW, so
        # every grid step is a full (unmasked) block.
        best = 1
        d = 1
        while d * d <= max_blocks:
            if max_blocks % d == 0:
                if d <= want_blocks:
                    best = max(best, d)
                other = max_blocks // d
                if other <= want_blocks:
                    best = max(best, other)
            d += 1
        tw = best * LANE
    else:
        tw = HW  # full-dim last block is always legal

    if C % sublane == 0:
        tc = sublane
        while (tc * 2) <= C and C % (tc * 2) == 0 and tc * 2 * tw * itemsize <= target_bytes:
            tc *= 2
    else:
        tc = C  # full-dim block is always legal
    return tc, tw


def apply_noise(x, scale, noise=None, *, key=None):
    """Pallas implementation of ApplyNoise.forward.

    Args:
      x:     [B, C, H, W] input tensor.
      scale: [1] scalar parameter.
      noise: optional [B, 1, H, W] noise tensor; sampled N(0,1) if None.
      key:   PRNG key used only when noise is None.
    """
    B, C, H, W = x.shape
    if noise is None:
        if key is None:
            key = jax.random.PRNGKey(0)
        # TODO(synk): noise generation could be fused in-kernel with
        # pltpu.prng_seed/prng_random_bits (saves an HBM round trip of the
        # noise plane), but the random stream would no longer match
        # jax.random.normal, so it stays in plain JAX here.
        noise = jax.random.normal(key, (B, 1, H, W), dtype=x.dtype)

    HW = H * W
    x3 = x.reshape(B, C, HW)        # lane-dense view (metadata-only reshape)
    n3 = noise.reshape(B, 1, HW)
    scale = scale.reshape((1,)).astype(jnp.float32)

    itemsize = jnp.dtype(x.dtype).itemsize
    tc, tw = _choose_tiles(C, HW, itemsize)
    # Channel-tile axis innermost -> noise block index repeats -> DMA reuse.
    grid = (B, HW // tw, pl.cdiv(C, tc))

    out = pl.pallas_call(
        _apply_noise_kernel,
        out_shape=jax.ShapeDtypeStruct((B, C, HW), x.dtype),
        grid=grid,
        in_specs=[
            pl.BlockSpec(memory_space=pltpu.MemorySpace.SMEM),       # scale (1,)
            pl.BlockSpec((1, tc, tw), lambda b, hw, c: (b, c, hw)),  # x slab
            pl.BlockSpec((1, 1, tw), lambda b, hw, c: (b, 0, hw)),   # noise slab (reused over c)
        ],
        out_specs=pl.BlockSpec((1, tc, tw), lambda b, hw, c: (b, c, hw)),
        compiler_params=pltpu.CompilerParams(
            dimension_semantics=("parallel", "parallel", "arbitrary"),
            vmem_limit_bytes=32 * 1024 * 1024,
        ),
    )(scale, x3, n3)
    return out.reshape(B, C, H, W)


if __name__ == "__main__":
    key = jax.random.PRNGKey(0)
    kx, knoise, kx2, kn2 = jax.random.split(key, 4)

    # Small shapes implied by the module.
    B, C, H, W = 2, 4, 16, 16
    x = jax.random.normal(kx, (B, C, H, W), dtype=jnp.float32)

    # Parameter: nn.Parameter(torch.zeros(1)) -> shape (1,). Deterministic,
    # non-zero init so the broadcasted FMA is actually exercised.
    scale = jnp.array([0.5], dtype=jnp.float32)

    # Case 1: noise=None (sampled internally, shape [B, 1, H, W]).
    out = jax.block_until_ready(apply_noise(x, scale, noise=None, key=knoise))
    noise_ref = jax.random.normal(knoise, (B, 1, H, W), dtype=x.dtype)
    ref = x + scale[0] * noise_ref
    assert out.shape == (B, C, H, W)
    assert jnp.allclose(out, ref, atol=1e-6), "mismatch vs reference (noise=None)"

    # Case 2: explicit noise provided.
    noise_given = jax.random.normal(jax.random.PRNGKey(42), (B, 1, H, W), jnp.float32)
    out2 = jax.block_until_ready(apply_noise(x, scale, noise=noise_given))
    ref2 = x + scale[0] * noise_given
    assert jnp.allclose(out2, ref2, atol=1e-6), "mismatch vs reference (explicit noise)"

    # Case 3: larger shape exercising multi-channel tiles, lane-dense slabs and
    # noise-block reuse across the inner channel-tile grid axis.
    B2, C2, H2, W2 = 2, 32, 128, 128
    x_big = jax.random.normal(kx2, (B2, C2, H2, W2), dtype=jnp.float32)
    n_big = jax.random.normal(kn2, (B2, 1, H2, W2), dtype=jnp.float32)
    out3 = jax.block_until_ready(apply_noise(x_big, scale, noise=n_big))
    ref3 = x_big + scale[0] * n_big
    assert jnp.allclose(out3, ref3, atol=1e-6), "mismatch vs reference (large tiled case)"

    print("KERNEL_OK")
</pallas_src>

<mosaic_0001>
module attributes {stable_mosaic.version = 11 : i64} {
  func.func @_apply_noise_kernel(%arg0: i32, %arg1: i32, %arg2: i32, %arg3: memref<1xf32, #tpu.memory_space<smem>>, %arg4: memref<1x4x256xf32, #tpu.memory_space<vmem>>, %arg5: memref<1x1x256xf32, #tpu.memory_space<vmem>>, %arg6: memref<1x4x256xf32, #tpu.memory_space<vmem>>) attributes {dimension_semantics = [#tpu.dimension_semantics<parallel>, #tpu.dimension_semantics<parallel>, #tpu.dimension_semantics<arbitrary>], iteration_bounds = array<i64: 2, 1, 1>, scalar_prefetch = 0 : i64, scratch_operands = 0 : i64, tpu.core_type = #tpu.core_type<tc>, window_params = [{transform_indices = @transform_0, window_bounds = array<i64: 1>}, {transform_indices = @transform_1, window_bounds = array<i64: 1, 4, 256>}, {transform_indices = @transform_2, window_bounds = array<i64: 1, 1, 256>}, {transform_indices = @transform_3, window_bounds = array<i64: 1, 4, 256>}]} {
    %c0 = arith.constant 0 : index
    %0 = memref.load %arg3[%c0] : memref<1xf32, #tpu.memory_space<smem>>
    %c0_0 = arith.constant 0 : index
    %c0_1 = arith.constant 0 : index
    %c0_2 = arith.constant 0 : index
    %1 = vector.load %arg4[%c0_0, %c0_1, %c0_2] : memref<1x4x256xf32, #tpu.memory_space<vmem>>, vector<1x4x256xf32>
    %c0_3 = arith.constant 0 : index
    %c0_4 = arith.constant 0 : index
    %c0_5 = arith.constant 0 : index
    %2 = vector.load %arg5[%c0_3, %c0_4, %c0_5] : memref<1x1x256xf32, #tpu.memory_space<vmem>>, vector<1x1x256xf32>
    %3 = vector.broadcast %0 : f32 to vector<1x1x256xf32>
    %4 = arith.mulf %3, %2 : vector<1x1x256xf32>
    %5 = vector.broadcast %4 : vector<1x1x256xf32> to vector<1x4x256xf32>
    %6 = arith.addf %1, %5 : vector<1x4x256xf32>
    %c0_6 = arith.constant 0 : index
    %c0_7 = arith.constant 0 : index
    %c0_8 = arith.constant 0 : index
    %7 = vector.load %arg6[%c0_6, %c0_7, %c0_8] : memref<1x4x256xf32, #tpu.memory_space<vmem>>, vector<1x4x256xf32>
    tpu.vector_store %arg6[%c0_6, %c0_7, %c0_8], %6 {strides = array<i32>} : memref<1x4x256xf32, #tpu.memory_space<vmem>>, vector<1x4x256xf32>,
    return
  }
  func.func @transform_0(%arg0: i32, %arg1: i32, %arg2: i32) -> i32 {
    %c0_i32 = arith.constant 0 : i32
    %c0_i32_0 = arith.constant 0 : i32
    return %c0_i32 : i32
  }
  func.func @transform_1(%arg0: i32, %arg1: i32, %arg2: i32) -> (i32, i32, i32) {
    %c0_i32 = arith.constant 0 : i32
    return %arg0, %arg2, %arg1 : i32, i32, i32
  }
  func.func @transform_2(%arg0: i32, %arg1: i32, %arg2: i32) -> (i32, i32, i32) {
    %c0_i32 = arith.constant 0 : i32
    %c0_i32_0 = arith.constant 0 : i32
    return %arg0, %c0_i32, %arg1 : i32, i32, i32
  }
  func.func @transform_3(%arg0: i32, %arg1: i32, %arg2: i32) -> (i32, i32, i32) {
    %c0_i32 = arith.constant 0 : i32
    return %arg0, %arg2, %arg1 : i32, i32, i32
  }
}

</mosaic_0001>

<bundles_post_ra>
// kernel: tpu_custom_call.1
= control target key start
LH: loop header
LB: loop body
LE: loop exit
PB: predicated region body
PF: predicated region fallthrough
CT: control target
= control target key end

     0   :  { %s814_s0 = inlined_call_operand.<no memory space> [shape: f32[1], index: 0, kind: input, shape index: {}]   ;;  %s815_s1 = inlined_call_operand.hbm [shape: f32[2,4,256], index: 1, kind: input, shape index: {}]   ;;  %s816_s2 = inlined_call_operand.hbm [shape: f32[2,1,256], index: 2, kind: input, shape index: {}]   ;;  %s817_s3 = inlined_call_operand.hbm [shape: f32[2,4,256], index: 3, kind: output, shape index: {}]  }
   0x1   :  { %8 = sst [smem:[#allocation2]] %s814_s0 }
   0x2   :  { %9 = vsyncpa [#allocation4], 0 }
   0x3   :  { %11 = vsyncpa [#allocation4 + $0x1], 0 }
   0x4   :  { %12 = vsyncpa [#allocation7], 0 }
   0x5   :  { %14 = vsyncpa [#allocation7 + $0x1], 0 }
   0x6   :  { %15 = vsyncpa [#allocation5], 0 }
   0x7   :  { %17 = vsyncpa [#allocation5 + $0x1], 0  ;;  %s676_s14 = smov 0   ;;  %s678_s15 = smov 0  }
   0x8   :  { %s680_s16 = smov 0   ;;  %s682_s17 = smov 0  }
   0x9   :  { %s684_s18 = smov 0   ;;  %s686_s19 = smov 0  }
   0xa LB: > { %s418_s0 = sadd.s32 4294967295, %s651_s19   ;;  %s419_s20 = sadd.s32 4294967294, %s651_s19   ;;  %s651_s19 = sphi %s686_s19, %s23_s19   ;;  %s647_s18 = sphi %s684_s18, %s827_s18   ;;  %s643_s17 = sphi %s682_s17, %s826_s17   ;;  %s639_s16 = sphi %s680_s16, %s825_s16   ;;  %s635_s15 = sphi %s678_s15, %s824_s15   ;;  %s631_s14 = sphi %s676_s14, %s823_s14  }
   0xb   : > { %s42_s21 = sadd.s32 1, %s647_s18  ;;  %s74_s22 = sadd.s32 1, %s639_s16 }
   0xc   : > { %p44_p0 = scmp.ge.s32.totalorder %s42_s21, 2  ;;  %p81_p1 = scmp.ne.s32.totalorder %s639_s16, %s635_s15 }
   0xd   : > { %p82_p2 = scmp.eq.s32.totalorder %s651_s19, 0  ;;  %p87_p3 = scmp.ne.s32.totalorder %s635_s15, %s631_s14 }
   0xe   : > { %s829_s21 = smov (%p44_p0, %s42_s21), 0  ;;  %p88_p5 = scmp.eq.s32.totalorder %s418_s0, 0 }
   0xf   : > { %p717_p4 = por %p82_p2, %p81_p1  ;;  %s67_s24 = ssub.s32 %s647_s18, %s829_s21 }
  0x10   : > { %p143_p6 = scmp.eq.s32.totalorder %s418_s0, 1  ;;  %p72_p7 = scmp.eq.s32.totalorder %s67_s24, 0 }
  0x11   : > { %p723_p8 = por %p88_p5, %p87_p3  ;;  %p149_p10 = scmp.eq.s32.totalorder %s419_s20, 1 }
  0x12   : > { %p727_p9 = por %p143_p6, %p81_p1  ;;  %p421_p12 = scmp.ge.s32.totalorder %s651_s19, 2 }
  0x13   : > { %s732_s27 = scalar_select %p72_p7, %s639_s16, %s74_s22  }
  0x14   : > { %p734_p11 = por %p149_p10, %p87_p3  ;;  %p455_p13 = scmp.lt.s32.totalorder %s651_s19, 2 }
  0x15   : > { %s172_s29 = sand.u32 1, %s639_s16   ;;  %s436_s4 = sshll.u32 %s647_s18, 3 }
  0x16   : > { %s422_s30 = sshll.u32 %s172_s29, 3  ;;  %s185_s7 = scalar_lea.hbm %s815_s1, %s436_s4 }
  0x17   : > { %s176_s8 = scalar_lea.vmem [#allocation3], %s422_s30  ;;  %s187_s10 = sshll.u32 %s185_s7, 4  ;;  %s188_s10 = int_to_ptr.hbm [resolvable:$true] %s187_s10 }
  0x18   : > { %s189_s9 = sshll.u32 %s176_s8, 4  ;;  %p747_p0 = pnand %p455_p13, %p717_p4  ;;  %s190_s9 = int_to_ptr.vmem [resolvable:$true] %s189_s9 }
  0x19   : > { %p427_p1 = scmp.ge.s32.totalorder %s651_s19, 1  ;;  %p215_p2 = scmp.lt.s32.totalorder %s651_s19, 3 }
  0x1a   : > { %s173_s12 = scalar_lea.sflag [#allocation4], %s172_s29  ;;  %s425_s13 = sshll.u32 %s172_s29, 1 }
  0x1b   : > { %447 = dma.hbm_to_vmem [thread:$0]  (!%p747_p0), %s188_s10, 128, %s190_s9, %s173_s12  }
  0x1c   : > { %p216_p3 = pnand %p427_p1, %p215_p2  ;;  %s426_s0 = sshll.u32 %s647_s18, 1 }
  0x1d   : > { %s206_s24 = scalar_lea.hbm %s816_s2, %s426_s0  ;;  %s200_s30 = scalar_lea.vmem [#allocation6], %s425_s13 }
  0x1e   : > { %s210_s23 = sshll.u32 %s200_s30, 4  ;;  %s208_s4 = sshll.u32 %s206_s24, 4  ;;  %s211_s23 = int_to_ptr.vmem [resolvable:$true] %s210_s23  ;;  %s209_s4 = int_to_ptr.hbm [resolvable:$true] %s208_s4 }
  0x1f   : > { %s197_s5 = scalar_lea.sflag [#allocation7], %s172_s29  ;;  %219 = sbr.rel (%p216_p3) target bundleno = 59 (0x3b), region = 32 }
  0x20   : > { %450 = dma.hbm_to_vmem [thread:$0]  (!%p747_p0), %s209_s4, 32, %s211_s23, %s197_s5  }
  0x21   : > { %s762_s6 = sand.u32 (!%p216_p3), 1, %s635_s15  }
  0x22   : > { %s428_s7 = sshll.u32 (!%p216_p3), %s762_s6, 3  ;;  %s222_s8 = scalar_lea.sflag (!%p216_p3), [#allocation4], %s762_s6 }
  0x23   : > { %s225_s9 = scalar_lea.vmem (!%p216_p3), [#allocation3], %s428_s7 }
  0x24   : > { %618 = dma.done.wait (%p723_p8), %s222_s8, 128  }
  0x25   : > { %620 = vsyncadd (%p723_p8), %s222_s8, 4294967168  ;;  %s429_s29 = sshll.u32 %s762_s6, 1  ;;  %s232_s10 = scalar_lea.sflag [#allocation7], %s762_s6 }
  0x26   : > { %s235_s11 = scalar_lea.vmem [#allocation6], %s429_s29 }
  0x27   : > { %622 = dma.done.wait (%p723_p8), %s232_s10, 32  }
  0x28   : > { %624 = vsyncadd (%p723_p8), %s232_s10, 4294967264  ;;  %s267_s12 = sld [smem:[#allocation2]]  ;;  %s437_s13 = sshll.u32 %s643_s17, 3  ;;  %v269_v0 = vld [vmem:[%s235_s11] sm:$0x3]  ;;  %vm276_vm0 = vcmask 1043456  }
  0x29   : > { %s297_s22 = scalar_lea.hbm %s817_s3, %s437_s13  ;;  %v268_v5 = vld [vmem:[%s225_s9] sm:$0xff]  ;;  %s263_s24 = scalar_lea.vmem [#allocation8], %s428_s7 }
  0x2a   : > { %s299_s25 = sshll.u32 %s263_s24, 4  ;;  %s301_s30 = sshll.u32 %s297_s22, 4  ;;  %s300_s25 = int_to_ptr.vmem [resolvable:$true] %s299_s25  ;;  %s302_s30 = int_to_ptr.hbm [resolvable:$true] %s301_s30 }
  0x2b   : > { %s282_s17 = scalar_lea.sflag [#allocation5], %s762_s6  ;;  %s579_s23 = sshra.s32 %s302_s30, 4  ;;  %s580_s23 = int_to_ptr.hbm [resolvable:$true] %s579_s23 }
  0x2c   : > { %s581_s4 = scalar_lea.hbm %s580_s23, 8  ;;  %s585_s9 = scalar_lea.hbm %s817_s3, 16 }
  0x2d   : > { %p582_p4 = scmp.ne.s32.totalorder %s580_s23, %s581_s4  ;;  %p586_p7 = scmp.lt.s32.totalorder %s580_s23, %s817_s3 }
  0x2e   : > { %v270_v1 = vstv %s267_s12  ;;  %p587_p8 = scmp.lt.s32.totalorder %s585_s9, %s581_s4 }
  0x2f   : > { %v271_v2 = vmul.f32 %v270_v1, %v269_v0  ;;  %p583_p5 = pnand %p582_p4, %p727_p9 }
  0x30   : > { %p588_p10 = por %p587_p8, %p586_p7 }
  0x31   : > { %v273_v3 = vperm.slane %v271_v2, 0  ;;  %v274_v4 = vperm.slane %v271_v2, 1  ;;  %p584_p6 = pneg %p583_p5 }
  0x33   : > { %v275_v6 = vrot.slane %v274_v4, 4  ;;  %p589_p13 = pnand %p588_p10, %p584_p6 }
  0x35   : > { %v277_v7 = vsel %vm276_vm0, %v273_v3, %v275_v6 }
  0x36   : > { %v279_v8 = vadd.f32 %v277_v7, %v268_v5 }
  0x38   : > { %280 = vst [vmem:[%s263_s24] sm:$0xff] %v279_v8 }
  0x39   : > { %592 = shalt.err (!%p589_p13)
}
  0x3a   : > { %442 = dma.vmem_to_hbm [thread:$0]  (%p727_p9), %s300_s25, 128, %s302_s30, %s282_s17  }
  0x3b PF: > { %s313_s6 = sand.u32 1, %s631_s14   ;;  %p452_p0 = pnand %p421_p12, %p734_p11 }
  0x3c   : > { %s314_s10 = scalar_lea.sflag [#allocation5], %s313_s6 }
  0x3d   : > { %p453_p1 = pneg %p452_p0 }
  0x3f   : > { %626 = dma.done.wait (%p453_p1), %s314_s10, 128  }
  0x40   : > { %628 = vsyncadd (%p453_p1), %s314_s10, 4294967168  ;;  %s23_s19 = sadd.s32 1, %s651_s19   ;;  %s823_s14 = smov %s635_s15 }
  0x41   : > { %p20_p2 = scmp.ge.s32.totalorder %s23_s19, 4   ;;  %s824_s15 = smov %s639_s16 }
  0x42   : > { %s825_s16 = smov %s732_s27  ;;  %s826_s17 = smov %s647_s18 }
  0x43   : > { %s827_s18 = smov %s829_s21  ;;  %22 = sbr.rel (!%p20_p2) target bundleno = 10 (0xa), region = 90 }
  0x48   :  { %320 = vsyncpa [#allocation4], 1 }
  0x49   :  { %322 = vsyncpa [#allocation4 + $0x1], 1 }
  0x4a   :  { %323 = vsyncpa [#allocation7], 1 }
  0x4b   :  { %325 = vsyncpa [#allocation7 + $0x1], 1 }
  0x4c   :  { %326 = vsyncpa [#allocation5], 1 }
  0x4d   :  { %328 = vsyncpa [#allocation5 + $0x1], 1 }

</bundles_post_ra>
